<compile_context>
chip_gen: v7x
topology: tpu7x:2x2x1
jax: 0.10.0
libtpu: 0.0.40
codegen_flags: <defaults>
</compile_context>

<pallas_src>
import functools

import jax
import jax.numpy as jnp
from jax.experimental import pallas as pl
from jax.experimental.pallas import tpu as pltpu


# ------------------------------ Pallas kernel ------------------------------

def _mlp_kernel(x_ref, w1_ref, b1_ref, w2_ref, b2_ref, o_ref, acc_ref):
    """One (row-tile, hidden-chunk) step of the fused 2-layer MLP.

    x:   (tm, in_dims)            f32/bf16 input rows
    w1:  (in_dims, th)   bf16     b1: (1, th)        f32
    w2:  (th, out_dims)  bf16     b2: (1, out_dims)  f32
    o:   (tm, out_dims)           acc: (tm, out_dims) f32 scratch
    """
    k = pl.program_id(1)

    @pl.when(k == 0)
    def _():
        acc_ref[...] = jnp.zeros_like(acc_ref)

    # Layer 1 (this hidden chunk): bf16 MXU matmul, f32 accumulate/epilogue.
    h = jnp.dot(x_ref[...].astype(jnp.bfloat16), w1_ref[...],
                preferred_element_type=jnp.float32)
    h = jnp.maximum(h + b1_ref[...], 0.0)          # bias + ReLU (exact per-chunk)

    # Layer 2 partial product, accumulated over hidden chunks in f32.
    acc_ref[...] += jnp.dot(h.astype(jnp.bfloat16), w2_ref[...],
                            preferred_element_type=jnp.float32)

    @pl.when(k == pl.num_programs(1) - 1)
    def _():
        o_ref[...] = (acc_ref[...] + b2_ref[...]).astype(o_ref.dtype)


# --------------------------------- wrapper ---------------------------------

def _round_up(x, m):
    return ((x + m - 1) // m) * m


def _pick_hidden_chunk(hidden, target):
    """Largest multiple-of-128 chunk (<= target) that divides `hidden`."""
    if hidden % 128 != 0 or hidden <= target:
        return hidden
    th = (min(target, hidden) // 128) * 128
    while hidden % th != 0:
        th -= 128
    return th


@functools.partial(jax.jit, static_argnames=("tile_m", "hidden_chunk"))
def simple_mlp_forward(x, params, *, tile_m=256, hidden_chunk=512):
    """x: (..., in_dims) -> (..., out_dims).  Single fused pallas_call."""
    w1, b1, w2, b2 = params["w1"], params["b1"], params["w2"], params["b2"]
    in_dims, hidden = w1.shape
    out_dims = w2.shape[1]

    lead = x.shape[:-1]
    m = 1
    for d in lead:
        m *= d
    x2 = x.reshape(m, in_dims)

    # Row tile: multiple of 8 sublanes.  No jnp.pad copy of x -- the last grid
    # block may be partial (garbage rows are read but never written back).
    tm = min(tile_m, _round_up(m, 8))
    if m > 128 and pl.cdiv(m, tm) == 1:
        # Give the "parallel" row axis >= 2 tiles so v7x can use both TCs.
        tm = _round_up(pl.cdiv(m, 2), 8)
    m_tiles = pl.cdiv(m, tm)

    # Hidden-chunk reduction axis (collapses to 1 chunk for small layers).
    th = _pick_hidden_chunk(hidden, hidden_chunk)
    n_k = hidden // th

    # bf16 weights for the MXU -- cast once here, NOT per grid step.
    w1_bf = w1.astype(jnp.bfloat16)
    w2_bf = w2.astype(jnp.bfloat16)
    b1_2d = b1.reshape(1, hidden).astype(jnp.float32)
    b2_2d = b2.reshape(1, out_dims).astype(jnp.float32)

    # Single-buffer operands whose index_map is constant over the whole grid;
    # keep default double-buffering where the block changes with k.
    const_kw = dict(pipeline_mode=pl.Buffered(1))
    chunk_kw = dict(pipeline_mode=pl.Buffered(1)) if n_k == 1 else {}

    # VMEM budget (bytes): tiles + resident weights + f32 accumulator.
    x_itm = jnp.dtype(x.dtype).itemsize
    o_itm = x_itm
    wbuf = 1 if n_k == 1 else 2
    vmem_bytes = (
        2 * tm * in_dims * x_itm            # x tile (double-buffered)
        + wbuf * in_dims * th * 2           # W1 chunk (bf16)
        + wbuf * th * 4                     # b1 chunk (f32)
        + wbuf * th * out_dims * 2          # W2 chunk (bf16)
        + 1 * out_dims * 4                  # b2 (single-buffered)
        + 2 * tm * out_dims * o_itm         # out tile
        + tm * out_dims * 4                 # acc scratch
    )
    vmem_limit = min(max(32 * 1024 * 1024, int(1.5 * vmem_bytes)),
                     56 * 1024 * 1024)      # stay under v7x's 64 MiB physical

    cost = pl.CostEstimate(
        flops=2 * m * (in_dims * hidden + hidden * out_dims),
        transcendentals=0,
        bytes_accessed=(m * in_dims * x_itm + m * out_dims * o_itm
                        + m_tiles * (in_dims * hidden + hidden * out_dims) * 2
                        + hidden * 4 + out_dims * 4),
    )

    out = pl.pallas_call(
        _mlp_kernel,
        out_shape=jax.ShapeDtypeStruct((m, out_dims), x.dtype),
        grid_spec=pltpu.PrefetchScalarGridSpec(
            num_scalar_prefetch=0,
            grid=(m_tiles, n_k),                              # reduction axis last
            in_specs=[
                pl.BlockSpec((tm, in_dims), lambda i, k: (i, 0)),       # x rows
                pl.BlockSpec((in_dims, th), lambda i, k: (0, k), **chunk_kw),  # W1
                pl.BlockSpec((1, th), lambda i, k: (0, k), **chunk_kw),        # b1
                pl.BlockSpec((th, out_dims), lambda i, k: (k, 0), **chunk_kw), # W2
                pl.BlockSpec((1, out_dims), lambda i, k: (0, 0), **const_kw),  # b2
            ],
            out_specs=pl.BlockSpec((tm, out_dims), lambda i, k: (i, 0)),
            scratch_shapes=[pltpu.VMEM((tm, out_dims), jnp.float32)],
        ),
        compiler_params=pltpu.CompilerParams(
            dimension_semantics=("parallel", "arbitrary"),
            vmem_limit_bytes=vmem_limit,
        ),
        cost_estimate=cost,
    )(x2, w1_bf, b1_2d, w2_bf, b2_2d)

    return out.reshape(*lead, out_dims)


# --------------------------- params / reference ----------------------------

def init_params(key, in_dims, hidden_dims, out_dims, scale=0.1):
    k1, k2, k3, k4 = jax.random.split(key, 4)
    return {
        "w1": scale * jax.random.normal(k1, (in_dims, hidden_dims), jnp.float32),
        "b1": scale * jax.random.normal(k2, (hidden_dims,), jnp.float32),
        "w2": scale * jax.random.normal(k3, (hidden_dims, out_dims), jnp.float32),
        "b2": scale * jax.random.normal(k4, (out_dims,), jnp.float32),
    }


def reference_forward(x, params):
    h = jnp.maximum(x @ params["w1"] + params["b1"], 0.0)
    return h @ params["w2"] + params["b2"]


# ---------------------------------- main -----------------------------------

if __name__ == "__main__":
    key = jax.random.PRNGKey(0)

    # ---- Test 1: the SimpleMLP toy shape (single row tile, single chunk) ----
    # SimpleMLP(in_dims=16, hidden_dims=128, out_dims=128, act='relu'),
    # input (batch=2, seq=8, in_dims=16) -> flattened M = 16 rows.
    k_x, k_p, key = jax.random.split(key, 3)
    B, S, IN_DIMS, HIDDEN, OUT_DIMS = 2, 8, 16, 128, 128
    x = jax.random.normal(k_x, (B, S, IN_DIMS), jnp.float32)
    params = init_params(k_p, IN_DIMS, HIDDEN, OUT_DIMS)

    out = jax.block_until_ready(simple_mlp_forward(x, params))
    assert out.shape == (B, S, OUT_DIMS), out.shape
    assert bool(jnp.all(jnp.isfinite(out)))
    ref = reference_forward(x, params)
    # bf16 matmul operands (f32 accumulate) -> loosened tolerance vs pure f32.
    assert bool(jnp.allclose(out, ref, atol=3e-2, rtol=3e-2)), \
        float(jnp.max(jnp.abs(out - ref)))

    # ---- Test 2: exercise multi row-tile (partial last block) + 2 hidden
    # chunks + multi-step accumulation, still at small shapes. ----
    k_x2, k_p2, key = jax.random.split(key, 3)
    B2, S2, IN2, HID2, OUT2 = 3, 13, 32, 256, 128        # M = 39 rows
    x2 = jax.random.normal(k_x2, (B2, S2, IN2), jnp.float32)
    params2 = init_params(k_p2, IN2, HID2, OUT2)

    out2 = jax.block_until_ready(
        simple_mlp_forward(x2, params2, tile_m=16, hidden_chunk=128))
    assert out2.shape == (B2, S2, OUT2), out2.shape
    assert bool(jnp.all(jnp.isfinite(out2)))
    ref2 = reference_forward(x2, params2)
    assert bool(jnp.allclose(out2, ref2, atol=3e-2, rtol=3e-2)), \
        float(jnp.max(jnp.abs(out2 - ref2)))

    print("KERNEL_OK")
</pallas_src>

<mosaic_0001>
module attributes {stable_mosaic.version = 11 : i64} {
  func.func @_mlp_kernel(%arg0: i32, %arg1: i32, %arg2: memref<16x16xf32, #tpu.memory_space<vmem>>, %arg3: memref<16x128xbf16, #tpu.memory_space<vmem>>, %arg4: memref<1x128xf32, #tpu.memory_space<vmem>>, %arg5: memref<128x128xbf16, #tpu.memory_space<vmem>>, %arg6: memref<1x128xf32, #tpu.memory_space<vmem>>, %arg7: memref<16x128xf32, #tpu.memory_space<vmem>>, %arg8: memref<16x128xf32, #tpu.memory_space<vmem>>) attributes {dimension_semantics = [#tpu.dimension_semantics<parallel>, #tpu.dimension_semantics<arbitrary>], iteration_bounds = array<i64: 1, 1>, scalar_prefetch = 0 : i64, scratch_operands = 1 : i64, tpu.core_type = #tpu.core_type<tc>, window_params = [{transform_indices = @transform_0, window_bounds = array<i64: 16, 16>}, {pipeline_mode = #tpu.pipeline_mode<synchronous>, transform_indices = @transform_1, window_bounds = array<i64: 16, 128>}, {pipeline_mode = #tpu.pipeline_mode<synchronous>, transform_indices = @transform_2, window_bounds = array<i64: 1, 128>}, {pipeline_mode = #tpu.pipeline_mode<synchronous>, transform_indices = @transform_3, window_bounds = array<i64: 128, 128>}, {pipeline_mode = #tpu.pipeline_mode<synchronous>, transform_indices = @transform_4, window_bounds = array<i64: 1, 128>}, {transform_indices = @transform_5, window_bounds = array<i64: 16, 128>}]} {
    %c0_i32 = arith.constant 0 : i32
    %0 = arith.cmpi eq, %arg1, %c0_i32 : i32
    %1 = arith.extui %0 : i1 to i32
    %c0_i32_0 = arith.constant 0 : i32
    %2 = arith.cmpi ne, %1, %c0_i32_0 : i32
    scf.if %2 {
      %cst_16 = arith.constant 0.000000e+00 : f32
      %21 = vector.broadcast %cst_16 : f32 to vector<16x128xf32>
      %c0_17 = arith.constant 0 : index
      %c0_18 = arith.constant 0 : index
      %22 = vector.load %arg8[%c0_17, %c0_18] : memref<16x128xf32, #tpu.memory_space<vmem>>, vector<16x128xf32>
      tpu.vector_store %arg8[%c0_17, %c0_18], %21 {strides = array<i32>} : memref<16x128xf32, #tpu.memory_space<vmem>>, vector<16x128xf32>,
    } else {
    }
    %c0 = arith.constant 0 : index
    %c0_1 = arith.constant 0 : index
    %3 = vector.load %arg2[%c0, %c0_1] : memref<16x16xf32, #tpu.memory_space<vmem>>, vector<16x16xf32>
    %4 = arith.truncf %3 : vector<16x16xf32> to vector<16x16xbf16>
    %c0_2 = arith.constant 0 : index
    %c0_3 = arith.constant 0 : index
    %5 = vector.load %arg3[%c0_2, %c0_3] : memref<16x128xbf16, #tpu.memory_space<vmem>>, vector<16x128xbf16>
    %cst = arith.constant dense<0.000000e+00> : vector<16x128xf32>
    %6 = tpu.matmul %4, %5, %cst {dimension_numbers = #tpu.dot_dimension_numbers<[1], [0], [0], [1], [0, 0, 1, 1], [], []>} : vector<16x16xbf16>, vector<16x128xbf16>, vector<16x128xf32> -> vector<16x128xf32>
    %c0_4 = arith.constant 0 : index
    %c0_5 = arith.constant 0 : index
    %7 = vector.load %arg4[%c0_4, %c0_5] : memref<1x128xf32, #tpu.memory_space<vmem>>, vector<1x128xf32>
    %8 = vector.broadcast %7 : vector<1x128xf32> to vector<16x128xf32>
    %9 = arith.addf %6, %8 : vector<16x128xf32>
    %cst_6 = arith.constant 0.000000e+00 : f32
    %10 = vector.broadcast %cst_6 : f32 to vector<16x128xf32>
    %11 = arith.maximumf %9, %10 : vector<16x128xf32>
    %c0_7 = arith.constant 0 : index
    %c0_8 = arith.constant 0 : index
    %12 = vector.load %arg8[%c0_7, %c0_8] : memref<16x128xf32, #tpu.memory_space<vmem>>, vector<16x128xf32>
    %13 = arith.truncf %11 : vector<16x128xf32> to vector<16x128xbf16>
    %c0_9 = arith.constant 0 : index
    %c0_10 = arith.constant 0 : index
    %14 = vector.load %arg5[%c0_9, %c0_10] : memref<128x128xbf16, #tpu.memory_space<vmem>>, vector<128x128xbf16>
    %cst_11 = arith.constant dense<0.000000e+00> : vector<16x128xf32>
    %15 = tpu.matmul %13, %14, %cst_11 {dimension_numbers = #tpu.dot_dimension_numbers<[1], [0], [0], [1], [0, 0, 1, 1], [], []>} : vector<16x128xbf16>, vector<128x128xbf16>, vector<16x128xf32> -> vector<16x128xf32>
    %16 = arith.addf %12, %15 : vector<16x128xf32>
    %c0_12 = arith.constant 0 : index
    %c0_13 = arith.constant 0 : index
    %17 = vector.load %arg8[%c0_12, %c0_13] : memref<16x128xf32, #tpu.memory_space<vmem>>, vector<16x128xf32>
    tpu.vector_store %arg8[%c0_12, %c0_13], %16 {strides = array<i32>} : memref<16x128xf32, #tpu.memory_space<vmem>>, vector<16x128xf32>,
    %c0_i32_14 = arith.constant 0 : i32
    %18 = arith.cmpi eq, %arg1, %c0_i32_14 : i32
    %19 = arith.extui %18 : i1 to i32
    %c0_i32_15 = arith.constant 0 : i32
    %20 = arith.cmpi ne, %19, %c0_i32_15 : i32
    scf.if %20 {
      %c0_16 = arith.constant 0 : index
      %c0_17 = arith.constant 0 : index
      %21 = vector.load %arg8[%c0_16, %c0_17] : memref<16x128xf32, #tpu.memory_space<vmem>>, vector<16x128xf32>
      %c0_18 = arith.constant 0 : index
      %c0_19 = arith.constant 0 : index
      %22 = vector.load %arg6[%c0_18, %c0_19] : memref<1x128xf32, #tpu.memory_space<vmem>>, vector<1x128xf32>
      %23 = vector.broadcast %22 : vector<1x128xf32> to vector<16x128xf32>
      %24 = arith.addf %21, %23 : vector<16x128xf32>
      %c0_20 = arith.constant 0 : index
      %c0_21 = arith.constant 0 : index
      %25 = vector.load %arg7[%c0_20, %c0_21] : memref<16x128xf32, #tpu.memory_space<vmem>>, vector<16x128xf32>
      tpu.vector_store %arg7[%c0_20, %c0_21], %24 {strides = array<i32>} : memref<16x128xf32, #tpu.memory_space<vmem>>, vector<16x128xf32>,
    } else {
    }
    return
  }
  func.func @transform_0(%arg0: i32, %arg1: i32) -> (i32, i32) {
    %c0_i32 = arith.constant 0 : i32
    %c0_i32_0 = arith.constant 0 : i32
    return %arg0, %c0_i32 : i32, i32
  }
  func.func @transform_1(%arg0: i32, %arg1: i32) -> (i32, i32) {
    %c0_i32 = arith.constant 0 : i32
    %c0_i32_0 = arith.constant 0 : i32
    return %c0_i32, %arg1 : i32, i32
  }
  func.func @transform_2(%arg0: i32, %arg1: i32) -> (i32, i32) {
    %c0_i32 = arith.constant 0 : i32
    %c0_i32_0 = arith.constant 0 : i32
    return %c0_i32, %arg1 : i32, i32
  }
  func.func @transform_3(%arg0: i32, %arg1: i32) -> (i32, i32) {
    %c0_i32 = arith.constant 0 : i32
    %c0_i32_0 = arith.constant 0 : i32
    return %arg1, %c0_i32 : i32, i32
  }
  func.func @transform_4(%arg0: i32, %arg1: i32) -> (i32, i32) {
    %c0_i32 = arith.constant 0 : i32
    %c0_i32_0 = arith.constant 0 : i32
    %c0_i32_1 = arith.constant 0 : i32
    return %c0_i32, %c0_i32_0 : i32, i32
  }
  func.func @transform_5(%arg0: i32, %arg1: i32) -> (i32, i32) {
    %c0_i32 = arith.constant 0 : i32
    %c0_i32_0 = arith.constant 0 : i32
    return %arg0, %c0_i32 : i32, i32
  }
}

</mosaic_0001>

<bundles_post_ra>
// kernel: simple_mlp_forward.1
= control target key start
LH: loop header
LB: loop body
LE: loop exit
PB: predicated region body
PF: predicated region fallthrough
CT: control target
= control target key end

     0   :  { %v324_v1 = vmov 0.0   ;;  %vm325_vm0 = vmmov 0   ;;  %vm46_vm1 = vcmask 130048   ;;  %s410_s0 = inlined_call_operand.vmem [shape: f32[16,16], index: 0, kind: input, shape index: {}]   ;;  %s411_s1 = inlined_call_operand.vmem [shape: bf16[16,128], index: 1, kind: input, shape index: {}]   ;;  %s412_s2 = inlined_call_operand.vmem [shape: f32[1,128], index: 2, kind: input, shape index: {}]   ;;  %s413_s3 = inlined_call_operand.vmem [shape: bf16[128,128], index: 3, kind: input, shape index: {}]   ;;  %s414_s4 = inlined_call_operand.vmem [shape: f32[1,128], index: 4, kind: input, shape index: {}]   ;;  %s415_s5 = inlined_call_operand.hbm [shape: f32[16,128], index: 5, kind: output, shape index: {}]  }
   0x1   :  { %v291_v0 = vld [vmem:[%s411_s1] sm:$0xff]   ;;  %260 = vmatprep.subr.bf16.mxu0 %v324_v1  ;;  %v29_v3 = vld [vmem:[%s410_s0 + $0x8] sm:$0xff]  ;;  %266 = vmatprep.subr.bf16.mxu1 %v324_v1  ;;  %v294_v7 = vld [vmem:[%s413_s3 + $0x10] sm:$0xff]  }
   0x2   :  { %v28_v2 = vld [vmem:[%s410_s0] sm:$0xff]  ;;  %261 = vmatpush3.bf16.msra.mxu0 %v291_v0  ;;  %262 = vmatprep.mubr.msk.bf16.mxu0 %vm325_vm0, %v324_v1  ;;  %v293_v6 = vld [vmem:[%s413_s3 + $0x8] sm:$0xff]  }
   0x3   :  { %v30_v4 = vpack.c.bf16 %v29_v3, %v28_v2  ;;  %v292_v5 = vld [vmem:[%s413_s3] sm:$0xff]   ;;  %282 = vmatprep.mubr.msk.bf16.mxu1 %vm325_vm0, %v324_v1 }
   0x4   :  { %267 = vmatpush3.bf16.msra.mxu1 %v292_v5 }
   0x5   :  { %263 = vmatmul.mubr.msk.bf16.vlgmr.msra.gmra.mrb[0].mxu0 %vm46_vm1, %v30_v4  ;;  %268 = vmatprep.subr.bf16.mxu1 %v324_v1 }
   0x8   :  { %269 = vmatpush3.bf16.msra.mxu1 %v293_v6 }
   0x9   :  { %270 = vmatprep.subr.bf16.mxu1 %v324_v1 }
   0xa   :  { %10 = vsyncpa [#allocation4], 0  ;;  %v295_v8 = vld [vmem:[%s413_s3 + $0x18] sm:$0xff]   ;;  %v296_v9 = vld [vmem:[%s413_s3 + $0x20] sm:$0xff]  }
   0xb   :  { %v297_v10 = vld [vmem:[%s413_s3 + $0x28] sm:$0xff]   ;;  %v298_v11 = vld [vmem:[%s413_s3 + $0x30] sm:$0xff]   ;;  %v299_v12 = vld [vmem:[%s413_s3 + $0x38] sm:$0xff]   ;;  %s326_s3 = smov [#allocation3]  }
   0xc   :  { %271 = vmatpush3.bf16.msra.mxu1 %v294_v7  ;;  %v237_v13 = vld [vmem:[%s412_s2] ss:$0 sm:$0xff]  ;;  %s226_s17 = sshll.u32 %s326_s3, 4  ;;  %s227_s17 = int_to_ptr.vmem [resolvable:$true] %s226_s17 }
   0xd   :  { %272 = vmatprep.subr.bf16.mxu1 %v324_v1  ;;  %v248_v23 = vld [vmem:[%s414_s4] ss:$0 sm:$0xff]  ;;  %s300_s2 = scalar_lea.vmem %s227_s17, 256  ;;  %p305_p1 = scmp.lt.s32.totalorder %s227_s17, %s227_s17 }
   0xe   :  { %p301_p0 = scmp.ne.s32.totalorder %s227_s17, %s300_s2  ;;  %p306_p2 = scmp.lt.s32.totalorder %s300_s2, %s300_s2 }
  0x10   :  { %273 = vmatpush3.bf16.msra.mxu1 %v295_v8  ;;  %p307_p3 = por %p306_p2, %p305_p1 }
  0x11   :  { %274 = vmatprep.subr.bf16.mxu1 %v324_v1 }
  0x12   :  { %p308_p4 = pnand %p307_p3, %p301_p0 }
  0x14   :  { %275 = vmatpush3.bf16.msra.mxu1 %v296_v9 }
  0x15   :  { %276 = vmatprep.subr.bf16.mxu1 %v324_v1 }
  0x18   :  { %277 = vmatpush3.bf16.msra.mxu1 %v297_v10 }
  0x19   :  { %278 = vmatprep.subr.bf16.mxu1 %v324_v1 }
  0x1c   :  { %279 = vmatpush3.bf16.msra.mxu1 %v298_v11 }
  0x1d   :  { %280 = vmatprep.subr.bf16.mxu1 %v324_v1 }
  0x20   :  { %281 = vmatpush3.bf16.msra.mxu1 %v299_v12 }
  0xd8   :  { %v84_v14 = vpop.f32.mrb[0].mxu0 }
  0xd9   :  { %v85_v15 = vadd.f32 %v237_v13, %v84_v14  ;;  %v264_v16 = vpop.f32.mrb[1].mxu0 }
  0xda   :  { %v87_v17 = vpop.f32.mrb[2].mxu0 }
  0xdb   :  { %v88_v18 = vadd.f32 %v237_v13, %v87_v17  ;;  %v265_v19 = vpop.f32.mrb[3].mxu0  ;;  %v91_v20 = vmax.f32 %v85_v15, 0.0 }
  0xdd   :  { %v92_v21 = vmax.f32 %v88_v18, 0.0 }
  0xdf   :  { %v95_v22 = vpack.c.bf16 %v92_v21, %v91_v20 }
  0xe1   :  { %283 = vmatmul.mubr.bf16.vlgmr.msra.gmra.mrb[0].mxu1 %v95_v22 }
 0x1b4   :  { %v194_v24 = vpop.f32.mrb[0].mxu1 }
 0x1b5   :  { %v217_v25 = vadd.f32 %v248_v23, %v194_v24  ;;  %v284_v26 = vpop.f32.mrb[1].mxu1 }
 0x1b6   :  { %v197_v27 = vpop.f32.mrb[2].mxu1 }
 0x1b7   :  { %219 = vst [vmem:[#allocation3] sm:$0xff] %v217_v25  ;;  %v218_v28 = vadd.f32 %v248_v23, %v197_v27  ;;  %v285_v29 = vpop.f32.mrb[3].mxu1 }
 0x1b9   :  { %220 = vst [vmem:[#allocation3 + $0x8] sm:$0xff] %v218_v28 }
 0x1ba   :  { %311 = shalt.err (!%p308_p4)
}
 0x1bb   :  { %s312_s19 = scalar_lea.hbm %s415_s5, 256 }
 0x1bc   :  { %p313_p5 = scmp.ne.s32.totalorder %s415_s5, %s312_s19  ;;  %p316_p6 = scmp.lt.u32.totalorder %s312_s19, %s415_s5 }
 0x1be   :  { %p318_p7 = pnand %p316_p6, %p313_p5 }
 0x1c0   :  { %321 = shalt.err (!%p318_p7)
}
 0x1c1   :  { %s327_s24 = smov 128   ;;  %s328_s25 = smov 8  }
 0x1c2   :  { %232 = dma.vmem_to_hbm [thread:$0]  %s227_s17, 256, %s415_s5, [#allocation4], %s327_s24, %s327_s24, %s328_s25  }
 0x1c3   :  { %322 = dma.done.wait [#allocation4], 256  }
 0x1c4   :  { %323 = vsyncadd [#allocation4], 4294967040 }
 0x1c5   :  { %236 = vsyncpa [#allocation4], 1 }

</bundles_post_ra>
